<compile_context>
chip_gen: v7x
topology: tpu7x:2x2x1
jax: 0.10.0
libtpu: 0.0.40
codegen_flags: <defaults>
</compile_context>

<pallas_src>
import jax
import jax.numpy as jnp
from jax.experimental import pallas as pl
from jax.experimental.pallas import tpu as pltpu


def _affine6_kernel(c_ref, x_ref, o_ref):
    """Fused 3-layer MLP collapsed to one affine map, computed on the VPU.

    c_ref : SMEM f32[8]  -- [w0..w5, bias, pad]
    x_ref : VMEM (6, T)  -- batch on the lane axis (lane-dense)
    o_ref : VMEM (1, T)  -- lane-dense output row
    """
    x = x_ref[...]                                   # (6, T) f32
    acc = x[0:1, :] * c_ref[0]                       # SMEM scalar * vreg broadcast
    acc = acc + x[1:2, :] * c_ref[1]
    acc = acc + x[2:3, :] * c_ref[2]
    acc = acc + x[3:4, :] * c_ref[3]
    acc = acc + x[4:5, :] * c_ref[4]
    acc = acc + x[5:6, :] * c_ref[5]
    o_ref[...] = (acc + c_ref[6]).astype(o_ref.dtype)


def shallow_three_layer(x, params, *, tile_b=512):
    """x: (B, 6) float32. params: PyTorch-shaped (out,in) weights / (out,) biases."""
    B, f_in = x.shape
    assert f_in == 6

    # --- Fold Linear(6,4) -> Linear(4,2) -> Linear(2,1) into one affine map ---
    # y = ((x W1^T + b1) W2^T + b2) W3^T + b3 = x @ W_eff + b_eff
    w_eff = (params["w1"].T @ params["w2"].T @ params["w3"].T).reshape(-1)      # (6,)
    b_eff = ((params["b1"] @ params["w2"].T + params["b2"]) @ params["w3"].T
             + params["b3"]).reshape(-1)                                        # (1,)
    coeffs = jnp.concatenate(
        [w_eff, b_eff, jnp.zeros((1,), jnp.float32)]).astype(jnp.float32)       # (8,)

    # --- Lane-dense layout: put the batch on the lane (last, 128-wide) axis ---
    x_t = x.astype(jnp.float32).T                                               # (6, B)
    # TODO(synk): optionally ship x as bf16 on v6e/v7x to halve HBM read traffic.

    # Pad batch up to a multiple of 128 so every tile is lane-aligned.
    B_pad = B if B % 128 == 0 else ((B + 127) // 128) * 128
    if B_pad != B:
        x_t = jnp.pad(x_t, ((0, 0), (0, B_pad - B)))

    # --- Tile selection: lane-axis tiles are a multiple of 128 dividing B_pad ---
    tb = min(tile_b, B_pad)
    tb = (tb // 128) * 128
    if tb == 0 or B_pad % tb != 0:
        tb = 128
    grid = (B_pad // tb,)

    out = pl.pallas_call(
        _affine6_kernel,
        out_shape=jax.ShapeDtypeStruct((1, B_pad), jnp.float32),
        grid_spec=pltpu.PrefetchScalarGridSpec(
            num_scalar_prefetch=0,
            grid=grid,
            in_specs=[
                # 8 coefficients, whole array resident in SMEM (scalar reads).
                pl.BlockSpec(memory_space=pltpu.MemorySpace.SMEM),
                # Lane-dense batch tile of the transposed input.
                pl.BlockSpec((6, tb), lambda i: (0, i)),
            ],
            out_specs=pl.BlockSpec((1, tb), lambda i: (0, i)),
        ),
        compiler_params=pltpu.CompilerParams(
            dimension_semantics=("parallel",)),
    )(coeffs, x_t)

    return out[:, :B].reshape(B, 1)


def init_params(key):
    """Deterministic synthetic init matching nn.Linear shapes (weight: (out,in))."""
    k1, k2, k3, k4, k5, k6 = jax.random.split(key, 6)
    return {
        "w1": jax.random.normal(k1, (4, 6), jnp.float32) * 0.1,
        "b1": jax.random.normal(k2, (4,), jnp.float32) * 0.1,
        "w2": jax.random.normal(k3, (2, 4), jnp.float32) * 0.1,
        "b2": jax.random.normal(k4, (2,), jnp.float32) * 0.1,
        "w3": jax.random.normal(k5, (1, 2), jnp.float32) * 0.1,
        "b3": jax.random.normal(k6, (1,), jnp.float32) * 0.1,
    }


def reference(x, p):
    """Un-fused chain, matching the PyTorch forward exactly."""
    h = x @ p["w1"].T + p["b1"]
    h = h @ p["w2"].T + p["b2"]
    h = h @ p["w3"].T + p["b3"]
    return h


if __name__ == "__main__":
    key = jax.random.PRNGKey(0)
    kx, kx2, kp = jax.random.split(key, 3)
    params = init_params(kp)

    # Lane-aligned batch (2-step grid at tb=128).
    B = 256
    x = jax.random.normal(kx, (B, 6), jnp.float32)
    out = jax.block_until_ready(shallow_three_layer(x, params))
    ref = reference(x, params)
    assert out.shape == (B, 1)
    assert jnp.allclose(out, ref, atol=1e-5, rtol=1e-4), (out, ref)

    # Non-aligned batch (exercises the padding path).
    B2 = 100
    x2 = jax.random.normal(kx2, (B2, 6), jnp.float32)
    out2 = jax.block_until_ready(shallow_three_layer(x2, params))
    ref2 = reference(x2, params)
    assert out2.shape == (B2, 1)
    assert jnp.allclose(out2, ref2, atol=1e-5, rtol=1e-4), (out2, ref2)

    print("KERNEL_OK")
</pallas_src>

<mosaic_0001>
module attributes {stable_mosaic.version = 11 : i64} {
  func.func @_affine6_kernel(%arg0: i32, %arg1: memref<8xf32, #tpu.memory_space<smem>>, %arg2: memref<6x256xf32, #tpu.memory_space<vmem>>, %arg3: memref<1x256xf32, #tpu.memory_space<vmem>>) attributes {dimension_semantics = [#tpu.dimension_semantics<parallel>], iteration_bounds = array<i64: 1>, scalar_prefetch = 0 : i64, scratch_operands = 0 : i64, tpu.core_type = #tpu.core_type<tc>, window_params = [{transform_indices = @transform_0, window_bounds = array<i64: 8>}, {transform_indices = @transform_1, window_bounds = array<i64: 6, 256>}, {transform_indices = @transform_2, window_bounds = array<i64: 1, 256>}]} {
    %c0 = arith.constant 0 : index
    %c0_0 = arith.constant 0 : index
    %0 = vector.load %arg2[%c0, %c0_0] : memref<6x256xf32, #tpu.memory_space<vmem>>, vector<6x256xf32>
    %1 = vector.extract_strided_slice %0 {offsets = [0, 0], sizes = [1, 256], strides = [1, 1]} : vector<6x256xf32> to vector<1x256xf32>
    %c0_1 = arith.constant 0 : index
    %2 = memref.load %arg1[%c0_1] : memref<8xf32, #tpu.memory_space<smem>>
    %3 = vector.broadcast %2 : f32 to vector<1x256xf32>
    %4 = arith.mulf %1, %3 : vector<1x256xf32>
    %5 = vector.extract_strided_slice %0 {offsets = [1, 0], sizes = [1, 256], strides = [1, 1]} : vector<6x256xf32> to vector<1x256xf32>
    %c1 = arith.constant 1 : index
    %6 = memref.load %arg1[%c1] : memref<8xf32, #tpu.memory_space<smem>>
    %7 = vector.broadcast %6 : f32 to vector<1x256xf32>
    %8 = arith.mulf %5, %7 : vector<1x256xf32>
    %9 = arith.addf %4, %8 : vector<1x256xf32>
    %10 = vector.extract_strided_slice %0 {offsets = [2, 0], sizes = [1, 256], strides = [1, 1]} : vector<6x256xf32> to vector<1x256xf32>
    %c2 = arith.constant 2 : index
    %11 = memref.load %arg1[%c2] : memref<8xf32, #tpu.memory_space<smem>>
    %12 = vector.broadcast %11 : f32 to vector<1x256xf32>
    %13 = arith.mulf %10, %12 : vector<1x256xf32>
    %14 = arith.addf %9, %13 : vector<1x256xf32>
    %15 = vector.extract_strided_slice %0 {offsets = [3, 0], sizes = [1, 256], strides = [1, 1]} : vector<6x256xf32> to vector<1x256xf32>
    %c3 = arith.constant 3 : index
    %16 = memref.load %arg1[%c3] : memref<8xf32, #tpu.memory_space<smem>>
    %17 = vector.broadcast %16 : f32 to vector<1x256xf32>
    %18 = arith.mulf %15, %17 : vector<1x256xf32>
    %19 = arith.addf %14, %18 : vector<1x256xf32>
    %20 = vector.extract_strided_slice %0 {offsets = [4, 0], sizes = [1, 256], strides = [1, 1]} : vector<6x256xf32> to vector<1x256xf32>
    %c4 = arith.constant 4 : index
    %21 = memref.load %arg1[%c4] : memref<8xf32, #tpu.memory_space<smem>>
    %22 = vector.broadcast %21 : f32 to vector<1x256xf32>
    %23 = arith.mulf %20, %22 : vector<1x256xf32>
    %24 = arith.addf %19, %23 : vector<1x256xf32>
    %25 = vector.extract_strided_slice %0 {offsets = [5, 0], sizes = [1, 256], strides = [1, 1]} : vector<6x256xf32> to vector<1x256xf32>
    %c5 = arith.constant 5 : index
    %26 = memref.load %arg1[%c5] : memref<8xf32, #tpu.memory_space<smem>>
    %27 = vector.broadcast %26 : f32 to vector<1x256xf32>
    %28 = arith.mulf %25, %27 : vector<1x256xf32>
    %29 = arith.addf %24, %28 : vector<1x256xf32>
    %c6 = arith.constant 6 : index
    %30 = memref.load %arg1[%c6] : memref<8xf32, #tpu.memory_space<smem>>
    %31 = vector.broadcast %30 : f32 to vector<1x256xf32>
    %32 = arith.addf %29, %31 : vector<1x256xf32>
    %c0_2 = arith.constant 0 : index
    %c0_3 = arith.constant 0 : index
    %33 = vector.load %arg3[%c0_2, %c0_3] : memref<1x256xf32, #tpu.memory_space<vmem>>, vector<1x256xf32>
    tpu.vector_store %arg3[%c0_2, %c0_3], %32 {strides = array<i32>} : memref<1x256xf32, #tpu.memory_space<vmem>>, vector<1x256xf32>,
    return
  }
  func.func @transform_0(%arg0: i32) -> i32 {
    %c0_i32 = arith.constant 0 : i32
    %c0_i32_0 = arith.constant 0 : i32
    return %c0_i32 : i32
  }
  func.func @transform_1(%arg0: i32) -> (i32, i32) {
    %c0_i32 = arith.constant 0 : i32
    %c0_i32_0 = arith.constant 0 : i32
    return %c0_i32, %arg0 : i32, i32
  }
  func.func @transform_2(%arg0: i32) -> (i32, i32) {
    %c0_i32 = arith.constant 0 : i32
    %c0_i32_0 = arith.constant 0 : i32
    return %c0_i32, %arg0 : i32, i32
  }
}

</mosaic_0001>

<bundles_post_ra>
// kernel: tpu_custom_call.1
= control target key start
LH: loop header
LB: loop body
LE: loop exit
PB: predicated region body
PF: predicated region fallthrough
CT: control target
= control target key end

     0   :  { %7 = vsyncpa [#allocation5], 0  ;;  %s269_s0 = inlined_call_operand.hbm [shape: f32[8], index: 0, kind: input, shape index: {}]   ;;  %s270_s1 = inlined_call_operand.hbm [shape: f32[6,256], index: 1, kind: input, shape index: {}]   ;;  %s271_s2 = inlined_call_operand.hbm [shape: f32[1,256], index: 2, kind: output, shape index: {}]  }
   0x1   :  { %8 = vsyncpa [#allocation3], 0 }
   0x2   :  { %9 = vsyncpa [#allocation4], 0  ;;  %s154_s11 = scalar_lea.hbm %s269_s0, 16 }
   0x3   :  { %p155_p0 = scmp.ne.s32.totalorder %s269_s0, %s154_s11  ;;  %p158_p1 = scmp.lt.u32.totalorder %s154_s11, %s269_s0 }
   0x5   :  { %p160_p2 = pnand %p158_p1, %p155_p0 }
   0x7   :  { %163 = shalt.err (!%p160_p2)
}
   0x8   :  { %s214_s16 = smov [#allocation2]   ;;  %s215_s19 = smov [#allocation6]  }
   0x9   :  { %17 = dma.hbm_to_smem %s269_s0, 16, %s214_s16, [#allocation5]  }
   0xa   :  { %s24_s20 = sshll.u32 %s215_s19, 4  ;;  %s164_s23 = scalar_lea.hbm %s270_s1, 256  ;;  %s25_s20 = int_to_ptr.vmem [resolvable:$true] %s24_s20 }
   0xb   :  { %p165_p3 = scmp.ne.s32.totalorder %s270_s1, %s164_s23  ;;  %p168_p4 = scmp.lt.u32.totalorder %s164_s23, %s270_s1 }
   0xd   :  { %p170_p5 = pnand %p168_p4, %p165_p3 }
   0xf   :  { %173 = shalt.err (!%p170_p5)
}
  0x10   :  { %s174_s28 = scalar_lea.vmem %s25_s20, 256  ;;  %p179_p7 = scmp.lt.s32.totalorder %s25_s20, %s25_s20 }
  0x11   :  { %p175_p6 = scmp.ne.s32.totalorder %s25_s20, %s174_s28  ;;  %p180_p8 = scmp.lt.s32.totalorder %s174_s28, %s174_s28 }
  0x13   :  { %p181_p9 = por %p180_p8, %p179_p7 }
  0x15   :  { %p182_p10 = pnand %p181_p9, %p175_p6 }
  0x17   :  { %185 = shalt.err (!%p182_p10)
}
  0x18   :  { %27 = dma.hbm_to_vmem [thread:$0]  %s270_s1, 256, %s25_s20, [#allocation3]  }
  0x19   :  { %208 = dma.done.wait [#allocation5], 16  }
  0x1a   :  { %209 = vsyncadd [#allocation5], 4294967280 }
  0x1b   :  { %210 = dma.done.wait [#allocation3], 256  }
  0x1c   :  { %211 = vsyncadd [#allocation3], 4294967040 }
  0x1d   :  { %34 = sfence }
  0x1e   :  { %s37_s30 = sld [smem:[#allocation2]]  ;;  %s144_s3 = sld [smem:[#allocation2 + $0x1]]  ;;  %v35_v0 = vld [vmem:[#allocation6] sm:$0x3f]  ;;  %v36_v1 = vld [vmem:[#allocation6 + $0x8] sm:$0x3f]  ;;  %v111_v30 = vlaneseq }
  0x1f   :  { %s145_s4 = sld [smem:[#allocation2 + $0x2]]  ;;  %s146_s5 = sld [smem:[#allocation2 + $0x3]]  ;;  %v216_v28 = vmov 1966171168  }
  0x20   :  { %s147_s6 = sld [smem:[#allocation2 + $0x4]]  ;;  %s148_s7 = sld [smem:[#allocation2 + $0x5]]  ;;  %v109_v29 = vunpack.c.l.s4 %v216_v28  ;;  %v112_v42 = vshrl.u32 %v111_v30, 7  ;;  %vm125_vm0 = vcmp.lt.s32.totalorder %v111_v30, 256 }
  0x21   :  { %s149_s1 = sld [smem:[#allocation2 + $0x6]]  ;;  %s217_s8 = smov [#allocation7]  }
  0x22   :  { %v110_v41 = vunpack.c.0.s8 %v109_v29  ;;  %s134_s9 = sshll.u32 %s217_s8, 4  ;;  %s135_s9 = int_to_ptr.vmem [resolvable:$true] %s134_s9 }
  0x23   :  { %s186_s10 = scalar_lea.vmem %s135_s9, 32  ;;  %p191_p12 = scmp.lt.s32.totalorder %s135_s9, %s135_s9 }
  0x24   :  { %v38_v2 = vstv %s37_s30  ;;  %v42_v5 = vstv %s144_s3  ;;  %v113_v48 = vsub.s32 %v110_v41, %v112_v42  ;;  %p187_p11 = scmp.ne.s32.totalorder %s135_s9, %s186_s10  ;;  %p192_p13 = scmp.lt.s32.totalorder %s186_s10, %s186_s10 }
  0x25   :  { %v39_v3 = vmul.f32 %v38_v2, %v35_v0  ;;  %v40_v4 = vmul.f32 %v38_v2, %v36_v1  ;;  %v54_v6 = vstv %s145_s4  ;;  %v43_v7 = vmul.f32 %v42_v5, %v35_v0 }
  0x26   :  { %v44_v8 = vmul.f32 %v42_v5, %v36_v1  ;;  %v55_v9 = vmul.f32 %v54_v6, %v35_v0  ;;  %v56_v10 = vmul.f32 %v54_v6, %v36_v1  ;;  %v66_v11 = vstv %s146_s5  ;;  %p193_p0 = por %p192_p13, %p191_p12 }
  0x27   :  { %v78_v12 = vstv %s147_s6  ;;  %v90_v13 = vstv %s148_s7  ;;  %v47_v14 = vrot.slane %v43_v7, 1  ;;  %v67_v18 = vmul.f32 %v66_v11, %v35_v0 }
  0x28   :  { %v48_v15 = vrot.slane %v44_v8, 1  ;;  %v59_v16 = vrot.slane %v55_v9, 2  ;;  %v60_v17 = vrot.slane %v56_v10, 2  ;;  %v68_v19 = vmul.f32 %v66_v11, %v36_v1  ;;  %p194_p1 = pnand %p193_p0, %p187_p11 }
  0x29   :  { %v79_v20 = vmul.f32 %v78_v12, %v35_v0  ;;  %v80_v21 = vmul.f32 %v78_v12, %v36_v1  ;;  %v51_v22 = vadd.f32 %v47_v14, %v39_v3  ;;  %v91_v24 = vmul.f32 %v90_v13, %v35_v0 }
  0x2a   :  { %v52_v23 = vadd.f32 %v48_v15, %v40_v4  ;;  %v92_v25 = vmul.f32 %v90_v13, %v36_v1  ;;  %v71_v26 = vrot.slane %v67_v18, 3  ;;  %v72_v27 = vrot.slane %v68_v19, 3 }
  0x2b   :  { %v63_v31 = vadd.f32 %v59_v16, %v51_v22  ;;  %v83_v33 = vrot.slane %v79_v20, 4  ;;  %v84_v34 = vrot.slane %v80_v21, 4  ;;  %v95_v37 = vrot.slane %v91_v24, 5 }
  0x2c   :  { %v64_v32 = vadd.f32 %v60_v17, %v52_v23  ;;  %v96_v38 = vrot.slane %v92_v25, 5  ;;  %v102_v43 = vstv %s149_s1 }
  0x2d   :  { %v75_v35 = vadd.f32 %v71_v26, %v63_v31 }
  0x2e   :  { %v76_v36 = vadd.f32 %v72_v27, %v64_v32 }
  0x2f   :  { %v87_v39 = vadd.f32 %v83_v33, %v75_v35 }
  0x30   :  { %v88_v40 = vadd.f32 %v84_v34, %v76_v36 }
  0x31   :  { %v99_v44 = vadd.f32 %v95_v37, %v87_v39 }
  0x32   :  { %v100_v45 = vadd.f32 %v96_v38, %v88_v40 }
  0x33   :  { %v103_v46 = vadd.f32 %v102_v43, %v99_v44 }
  0x34   :  { %v104_v47 = vadd.f32 %v102_v43, %v100_v45 }
  0x36   :  { %v107_v49 = vcombine.low %v103_v46, %v104_v47 }
  0x38   :  { %v114_v50 = vrot.slane %v107_v49, %v113_v48 }
  0x3a   :  { %v121_v51 = vrot.slane %v114_v50, %v113_v48 }
  0x3c   :  { %127 = vst.msk [vmem:[#allocation7] sm:$0x3] %vm125_vm0, %v121_v51 }
  0x3d   :  { %197 = shalt.err (!%p194_p1)
}
  0x3e   :  { %s198_s13 = scalar_lea.hbm %s271_s2, 32 }
  0x3f   :  { %p199_p2 = scmp.ne.s32.totalorder %s271_s2, %s198_s13  ;;  %p202_p3 = scmp.lt.u32.totalorder %s198_s13, %s271_s2 }
  0x41   :  { %p204_p4 = pnand %p202_p3, %p199_p2 }
  0x43   :  { %207 = shalt.err (!%p204_p4)
}
  0x44   :  { %137 = dma.vmem_to_hbm [thread:$0]  %s135_s9, 32, %s271_s2, [#allocation4]  }
  0x45   :  { %212 = dma.done.wait [#allocation4], 32  }
  0x46   :  { %213 = vsyncadd [#allocation4], 4294967264 }
  0x47   :  { %141 = vsyncpa [#allocation3], 1 }
  0x48   :  { %142 = vsyncpa [#allocation4], 1 }
  0x49   :  { %143 = vsyncpa [#allocation5], 1 }

</bundles_post_ra>
